<compile_context>
chip_gen: v7x
topology: tpu7x:2x2x1
jax: 0.10.0
libtpu: 0.0.40
codegen_flags: <defaults>
</compile_context>

<pallas_src>
import math

import jax
import jax.numpy as jnp
import numpy as np
from jax import lax
from jax.experimental import pallas as pl
from jax.experimental.pallas import tpu as pltpu


def _physical_vmem_bytes():
    """Physical VMEM of the local TPU generation (fallback: v7x per-TC 64 MiB)."""
    try:
        info = pltpu.get_tpu_info()
        return int(getattr(info, "vmem_capacity_bytes", 64 * 2**20))
    except Exception:
        return 64 * 2**20


def tv_loss(x, tv_loss_weight=1.0):
    """x: (N, C, H, W). Returns a float32 scalar matching the PyTorch TVLoss."""
    n, c, h, w = x.shape
    nc = n * c
    L = h * w
    elem_bytes = jnp.dtype(x.dtype).itemsize

    # ---- block geometry -------------------------------------------------
    # sublane packing of the input dtype: 8 rows for 4B, 16 for 2B, 32 for 1B
    sub = max(8, (4 // max(1, elem_bytes)) * 8)
    # ~4 MiB of f32 working set per grid step (fits v7x budget; v5e/v6e have
    # more VMEM so it is only an upside there).
    target_elems = 1 << 20

    # L tiles must be lane-dense (multiple of 128) and aligned to image rows
    # (multiple of w) so vertical pairs only cross tiles at thin seams.
    tl_unit = math.lcm(w, 128)
    # TODO(synk): images whose W makes lcm(W,128)*sub far exceed the VMEM
    # target would need element-level (halo) tiling; not needed for realistic
    # image shapes.
    if L <= tl_unit:
        tl = L
    else:
        k = max(1, target_elems // (sub * tl_unit))
        tl = min(k * tl_unit, L)

    b_blk = max(sub, (target_elems // tl) // sub * sub)
    if b_blk >= nc:
        b_blk = nc  # block spans the full slab axis (always a legal block dim)

    nb = pl.cdiv(nc, b_blk)
    nLt = pl.cdiv(L, tl)

    # Tiny inputs: still emit >=2 grid steps so both v7x TensorCores get work.
    if nb * nLt == 1:
        if nc > sub:
            b_blk = ((pl.cdiv(nc, 2) + sub - 1) // sub) * sub
            nb = pl.cdiv(nc, b_blk)
        elif L > tl_unit:
            tl = max(1, (L // tl_unit) // 2) * tl_unit
            nLt = pl.cdiv(L, tl)

    # ---- VMEM accounting (review item: explicit, clamped per generation) --
    blk_in_bytes = b_blk * tl * elem_bytes
    blk_f32_bytes = b_blk * tl * 4
    # 2x double-buffered input + ~8x f32-sized temporaries (cast, roll/slice
    # results, masked diffs, masks) + output tiles + slack.
    vmem_need = 2 * blk_in_bytes + 8 * blk_f32_bytes + 4 * (2 * 128 * 4) + (2 << 20)
    phys_vmem = _physical_vmem_bytes()
    vmem_cap = (48 * 2**20) if phys_vmem <= (64 * 2**20) else (100 * 2**20)
    vmem_limit = int(min(vmem_cap, max(32 * 2**20, vmem_need)))

    x2d = x.reshape(nc, L)
    use_slice_v = (w % 128 == 0) and (tl > w)

    def _tv_kernel(x_ref, out_ref):
        i0 = pl.program_id(0) * b_blk      # first slab row of this block
        l0 = pl.program_id(1) * tl         # first flattened element of this L tile

        xv = x_ref[...].astype(jnp.float32)                     # (b_blk, tl)

        ri = lax.broadcasted_iota(jnp.int32, (b_blk, 1), 0)
        li = lax.broadcasted_iota(jnp.int32, (1, tl), 1)
        row_ok = ri < (nc - i0)            # ragged last slab block
        lane_in = li < (L - l0)            # ragged last L tile

        # Column within the image row; exact f32 floor-div (tl <= 2**17, so
        # the +0.5 trick cannot round across an integer).  Avoids vector
        # integer mod, which may not lower on TPU.
        li_f = li.astype(jnp.float32)
        qf = jnp.floor((li_f + 0.5) * (1.0 / w))
        col = li_f - qf * w
        not_last_col = col < (w - 1.5)     # col != w - 1

        # ---- horizontal TV: (x[i+1] - x[i])^2 within an image row ---------
        mask_w = row_ok & lane_in & not_last_col
        x_next = pltpu.roll(xv, shift=tl - 1, axis=1) if tl > 1 else xv
        dw_ = jnp.where(mask_w, x_next - xv, 0.0)
        w_part = jnp.sum(dw_ * dw_)

        # ---- vertical TV: (x[i+w] - x[i])^2 (seam pairs handled outside) ---
        if tl > w:
            hlim = jnp.minimum(tl - w, L - w - l0)
            if use_slice_v:
                # lane-aligned static slices: no XLU rotate needed
                mask_h = row_ok & (li[:, : tl - w] < hlim)
                dh_ = jnp.where(mask_h, xv[:, w:] - xv[:, : tl - w], 0.0)
            else:
                mask_h = row_ok & (li < hlim)
                x_down = pltpu.roll(xv, shift=tl - w, axis=1)
                dh_ = jnp.where(mask_h, x_down - xv, 0.0)
            h_part = jnp.sum(dh_ * dh_)
        else:
            h_part = jnp.float32(0.0)

        # TODO(synk): v7x-only MXU-offloaded lane reduction skipped to keep
        # exact f32 accumulation.
        sel = lax.broadcasted_iota(jnp.int32, (2, 128), 0)
        out_ref[0, 0] = jnp.where(sel == 0, h_part, w_part)

    partials = pl.pallas_call(
        _tv_kernel,
        out_shape=jax.ShapeDtypeStruct((nb, nLt, 2, 128), jnp.float32),
        grid_spec=pltpu.PrefetchScalarGridSpec(
            num_scalar_prefetch=0,
            grid=(nb, nLt),
            in_specs=[pl.BlockSpec((b_blk, tl), lambda i, j: (i, j))],
            out_specs=pl.BlockSpec((1, 1, 2, 128), lambda i, j: (i, j, 0, 0)),
        ),
        compiler_params=pltpu.CompilerParams(
            dimension_semantics=("parallel", "parallel"),
            vmem_limit_bytes=vmem_limit,
        ),
        cost_estimate=pl.CostEstimate(
            flops=10 * nc * L,
            transcendentals=0,
            bytes_accessed=nc * L * elem_bytes + nb * nLt * 2 * 128 * 4,
        ),
    )(x2d)

    h_tv = jnp.sum(partials[:, :, 0, 0])
    w_tv = jnp.sum(partials[:, :, 1, 0])

    # Vertical pairs across L-tile seams (last image row of each non-final
    # tile vs. the row below): a ~1/rows_per_tile fraction of the input,
    # cheap to add in plain JAX.
    if nLt > 1:
        rpt = tl // w
        br = np.arange(1, nLt, dtype=np.int32) * rpt - 1        # all < h - 1
        x3 = x2d.reshape(nc, h, w)
        top = x3[:, br, :].astype(jnp.float32)
        bot = x3[:, br + 1, :].astype(jnp.float32)
        h_tv = h_tv + jnp.sum((bot - top) ** 2)

    # Same normalization (and same h==1 / w==1 divide-by-zero hazard) as the
    # PyTorch module: counts exclude the batch dim, batch divided last.
    count_h = c * (h - 1) * w
    count_w = c * h * (w - 1)
    return tv_loss_weight * 2.0 * (h_tv / count_h + w_tv / count_w) / n


def _tv_ref(x, weight=1.0):
    n, c, h, w = x.shape
    xf = x.astype(jnp.float32)
    h_tv = jnp.sum((xf[:, :, 1:, :] - xf[:, :, :-1, :]) ** 2)
    w_tv = jnp.sum((xf[:, :, :, 1:] - xf[:, :, :, :-1]) ** 2)
    count_h = c * (h - 1) * w
    count_w = c * h * (w - 1)
    return weight * 2.0 * (h_tv / count_h + w_tv / count_w) / n


if __name__ == "__main__":
    key = jax.random.PRNGKey(0)
    cases = [
        (2, 4, 16, 16),    # main case for the module
        (1, 3, 24, 40),    # non-square H != W, ragged slab block + ragged L tile (roll path)
        (1, 2, 8, 128),    # W % 128 == 0 -> lane-aligned-slice vertical path
    ]
    out_main = None
    for idx, shape in enumerate(cases):
        key, sub_key = jax.random.split(key)
        x = jax.random.normal(sub_key, shape, dtype=jnp.float32)
        out = jax.block_until_ready(tv_loss(x, tv_loss_weight=1.0))
        ref = jax.block_until_ready(_tv_ref(x, 1.0))
        assert jnp.allclose(out, ref, rtol=1e-5, atol=1e-5), (shape, out, ref)
        if idx == 0:
            out_main = out
    assert out_main is not None
    print("KERNEL_OK")
</pallas_src>

<mosaic_0001>
module attributes {stable_mosaic.version = 11 : i64} {
  func.func @_tv_kernel(%arg0: i32, %arg1: i32, %arg2: memref<8x128xf32, #tpu.memory_space<vmem>>, %arg3: memref<1x1x2x128xf32, #tpu.memory_space<vmem>>) attributes {dimension_semantics = [#tpu.dimension_semantics<parallel>, #tpu.dimension_semantics<parallel>], iteration_bounds = array<i64: 1, 2>, scalar_prefetch = 0 : i64, scratch_operands = 0 : i64, tpu.core_type = #tpu.core_type<tc>, window_params = [{transform_indices = @transform_0, window_bounds = array<i64: 8, 128>}, {transform_indices = @transform_1, window_bounds = array<i64: 1, 1, 2, 128>}]} {
    %c8_i32 = arith.constant 8 : i32
    %0 = arith.muli %arg0, %c8_i32 : i32
    %c128_i32 = arith.constant 128 : i32
    %1 = arith.muli %arg1, %c128_i32 : i32
    %c0 = arith.constant 0 : index
    %c0_0 = arith.constant 0 : index
    %2 = vector.load %arg2[%c0, %c0_0] : memref<8x128xf32, #tpu.memory_space<vmem>>, vector<8x128xf32>
    %3 = tpu.iota {dimensions = array<i32: 0>} : vector<8x1xi32>
    %4 = tpu.iota {dimensions = array<i32: 1>} : vector<1x128xi32>
    %c8_i32_1 = arith.constant 8 : i32
    %5 = arith.subi %c8_i32_1, %0 : i32
    %6 = vector.broadcast %5 : i32 to vector<8x1xi32>
    %7 = arith.cmpi slt, %3, %6 : vector<8x1xi32>
    %c256_i32 = arith.constant 256 : i32
    %8 = arith.subi %c256_i32, %1 : i32
    %9 = vector.broadcast %8 : i32 to vector<1x128xi32>
    %10 = arith.cmpi slt, %4, %9 : vector<1x128xi32>
    %11 = arith.sitofp %4 : vector<1x128xi32> to vector<1x128xf32>
    %cst = arith.constant 5.000000e-01 : f32
    %12 = vector.broadcast %cst : f32 to vector<1x128xf32>
    %13 = arith.addf %11, %12 : vector<1x128xf32>
    %cst_2 = arith.constant 6.250000e-02 : f32
    %14 = vector.broadcast %cst_2 : f32 to vector<1x128xf32>
    %15 = arith.mulf %13, %14 : vector<1x128xf32>
    %16 = math.floor %15 : vector<1x128xf32>
    %cst_3 = arith.constant 1.600000e+01 : f32
    %17 = vector.broadcast %cst_3 : f32 to vector<1x128xf32>
    %18 = arith.mulf %16, %17 : vector<1x128xf32>
    %19 = arith.subf %11, %18 : vector<1x128xf32>
    %cst_4 = arith.constant 1.450000e+01 : f32
    %20 = vector.broadcast %cst_4 : f32 to vector<1x128xf32>
    %21 = arith.cmpf olt, %19, %20 : vector<1x128xf32>
    %22 = vector.broadcast %7 : vector<8x1xi1> to vector<8x128xi1>
    %23 = vector.broadcast %10 : vector<1x128xi1> to vector<8x128xi1>
    %24 = arith.andi %22, %23 : vector<8x128xi1>
    %25 = vector.broadcast %21 : vector<1x128xi1> to vector<8x128xi1>
    %26 = arith.andi %24, %25 : vector<8x128xi1>
    %c127_i32 = arith.constant 127 : i32
    %27 = tpu.dynamic_rotate %2 by %c127_i32 dim 1 : vector<8x128xf32>, i32 -> vector<8x128xf32>
    %28 = arith.subf %27, %2 : vector<8x128xf32>
    %cst_5 = arith.constant 0.000000e+00 : f32
    %29 = vector.broadcast %cst_5 : f32 to vector<8x128xf32>
    %30 = arith.select %26, %28, %29 : vector<8x128xi1>, vector<8x128xf32>
    %31 = arith.mulf %30, %30 : vector<8x128xf32>
    %32 = vector.shape_cast %31 : vector<8x128xf32> to vector<1x8x128xf32>
    %cst_6 = arith.constant dense<0.000000e+00> : vector<1xf32>
    %33 = vector.multi_reduction <add>, %32, %cst_6 [1, 2] : vector<1x8x128xf32> to vector<1xf32>
    %34 = vector.shape_cast %33 : vector<1xf32> to vector<1x1x1xf32>
    %35 = vector.extract %34[0, 0, 0] : f32 from vector<1x1x1xf32>
    %c240_i32 = arith.constant 240 : i32
    %36 = arith.subi %c240_i32, %1 : i32
    %c112_i32 = arith.constant 112 : i32
    %37 = arith.minsi %c112_i32, %36 : i32
    %38 = vector.broadcast %37 : i32 to vector<1x128xi32>
    %39 = arith.cmpi slt, %4, %38 : vector<1x128xi32>
    %40 = vector.broadcast %7 : vector<8x1xi1> to vector<8x128xi1>
    %41 = vector.broadcast %39 : vector<1x128xi1> to vector<8x128xi1>
    %42 = arith.andi %40, %41 : vector<8x128xi1>
    %c112_i32_7 = arith.constant 112 : i32
    %43 = tpu.dynamic_rotate %2 by %c112_i32_7 dim 1 : vector<8x128xf32>, i32 -> vector<8x128xf32>
    %44 = arith.subf %43, %2 : vector<8x128xf32>
    %cst_8 = arith.constant 0.000000e+00 : f32
    %45 = vector.broadcast %cst_8 : f32 to vector<8x128xf32>
    %46 = arith.select %42, %44, %45 : vector<8x128xi1>, vector<8x128xf32>
    %47 = arith.mulf %46, %46 : vector<8x128xf32>
    %48 = vector.shape_cast %47 : vector<8x128xf32> to vector<1x8x128xf32>
    %cst_9 = arith.constant dense<0.000000e+00> : vector<1xf32>
    %49 = vector.multi_reduction <add>, %48, %cst_9 [1, 2] : vector<1x8x128xf32> to vector<1xf32>
    %50 = vector.shape_cast %49 : vector<1xf32> to vector<1x1x1xf32>
    %51 = vector.extract %50[0, 0, 0] : f32 from vector<1x1x1xf32>
    %52 = tpu.iota {dimensions = array<i32: 0>} : vector<2x128xi32>
    %c0_i32 = arith.constant 0 : i32
    %53 = vector.broadcast %c0_i32 : i32 to vector<2x128xi32>
    %54 = arith.cmpi eq, %52, %53 : vector<2x128xi32>
    %55 = vector.broadcast %51 : f32 to vector<2x128xf32>
    %56 = vector.broadcast %35 : f32 to vector<2x128xf32>
    %57 = arith.select %54, %55, %56 : vector<2x128xi1>, vector<2x128xf32>
    %c0_10 = arith.constant 0 : index
    %c0_11 = arith.constant 0 : index
    %c0_12 = arith.constant 0 : index
    %c0_13 = arith.constant 0 : index
    %58 = vector.load %arg3[%c0_10, %c0_11, %c0_12, %c0_13] : memref<1x1x2x128xf32, #tpu.memory_space<vmem>>, vector<1x1x2x128xf32>
    %59 = vector.shape_cast %58 : vector<1x1x2x128xf32> to vector<2x128xf32>
    %60 = vector.shape_cast %57 : vector<2x128xf32> to vector<1x1x2x128xf32>
    tpu.vector_store %arg3[%c0_10, %c0_11, %c0_12, %c0_13], %60 {strides = array<i32>} : memref<1x1x2x128xf32, #tpu.memory_space<vmem>>, vector<1x1x2x128xf32>,
    return
  }
  func.func @transform_0(%arg0: i32, %arg1: i32) -> (i32, i32) {
    %c0_i32 = arith.constant 0 : i32
    return %arg0, %arg1 : i32, i32
  }
  func.func @transform_1(%arg0: i32, %arg1: i32) -> (i32, i32, i32, i32) {
    %c0_i32 = arith.constant 0 : i32
    %c0_i32_0 = arith.constant 0 : i32
    %c0_i32_1 = arith.constant 0 : i32
    return %arg0, %arg1, %c0_i32, %c0_i32_0 : i32, i32, i32, i32
  }
}

</mosaic_0001>

<bundles_post_ra>
// kernel: tpu_custom_call.1
= control target key start
LH: loop header
LB: loop body
LE: loop exit
PB: predicated region body
PF: predicated region fallthrough
CT: control target
= control target key end

     0   :  { %6 = vsyncpa [#allocation3], 0  ;;  %s701_s0 = inlined_call_operand.hbm [shape: f32[8,256], index: 0, kind: input, shape index: {}]   ;;  %s702_s1 = inlined_call_operand.hbm [shape: f32[1,2,2,128], index: 1, kind: output, shape index: {}]  }
   0x1   :  { %8 = vsyncpa [#allocation3 + $0x1], 0 }
   0x2   :  { %9 = vsyncpa [#allocation4], 0 }
   0x3   :  { %11 = vsyncpa [#allocation4 + $0x1], 0  ;;  %s527_s6 = smov 0   ;;  %s529_s7 = smov 0  }
   0x4   :  { %s531_s8 = smov 0   ;;  %s533_s9 = smov 0  }
   0x5   :  { %s535_s10 = smov 0   ;;  %s537_s11 = smov 0  }
   0x6 LB: > { %s317_s12 = sadd.s32 4294967295, %s511_s11   ;;  %s318_s13 = sadd.s32 4294967294, %s511_s11   ;;  %s511_s11 = sphi %s537_s11, %s17_s11   ;;  %s507_s10 = sphi %s535_s10, %s718_s10   ;;  %s503_s9 = sphi %s533_s9, %s717_s9   ;;  %s499_s8 = sphi %s531_s8, %s716_s8   ;;  %s495_s7 = sphi %s529_s7, %s715_s7   ;;  %s491_s6 = sphi %s527_s6, %s714_s6  }
   0x7   : > { %s26_s14 = sadd.s32 1, %s507_s10  ;;  %s38_s15 = sadd.s32 1, %s499_s8 }
   0x8   : > { %p27_p0 = scmp.ge.s32.totalorder %s26_s14, 2  ;;  %p45_p1 = scmp.ne.s32.totalorder %s499_s8, %s495_s7 }
   0x9   : > { %p46_p2 = scmp.eq.s32.totalorder %s511_s11, 0  ;;  %p51_p3 = scmp.ne.s32.totalorder %s495_s7, %s491_s6 }
   0xa   : > { %s720_s14 = smov (%p27_p0, %s26_s14), 0  ;;  %p52_p5 = scmp.eq.s32.totalorder %s317_s12, 0 }
   0xb   : > { %p568_p4 = por %p46_p2, %p45_p1  ;;  %s34_s17 = ssub.s32 %s507_s10, %s720_s14 }
   0xc   : > { %p77_p6 = scmp.eq.s32.totalorder %s317_s12, 1  ;;  %p36_p7 = scmp.eq.s32.totalorder %s34_s17, 0 }
   0xd   : > { %p574_p8 = por %p52_p5, %p51_p3  ;;  %p83_p10 = scmp.eq.s32.totalorder %s318_s13, 1 }
   0xe   : > { %p578_p9 = por %p77_p6, %p45_p1  ;;  %p347_p13 = scmp.lt.s32.totalorder %s511_s11, 2 }
   0xf   : > { %s583_s20 = scalar_select %p36_p7, %s499_s8, %s38_s15  }
  0x10   : > { %s706_s19 = scalar_select %p578_p9, 1, 0 }
  0x11   : > { %p585_p11 = por %p83_p10, %p51_p3  ;;  %s103_s22 = sand.u32 1, %s499_s8  }
  0x12   : > { %s321_s23 = sshll.u32 %s103_s22, 3  ;;  %s322_s24 = sshll.u32 %s507_s10, 7 }
  0x13   : > { %s707_s21 = scalar_select %p585_p11, 1, 0 }
  0x14   : > { %s596_s27 = scalar_lea.hbm %s701_s0, %s322_s24  ;;  %s107_s28 = scalar_lea.vmem [#allocation2], %s321_s23 }
  0x15   : > { %s116_s29 = sshll.u32 %s107_s28, 4  ;;  %p602_p0 = pnand %p347_p13, %p568_p4  ;;  %s598_s29 = int_to_ptr.vmem [resolvable:$true] %s116_s29 }
  0x16   : > { %s104_s2 = scalar_lea.sflag [#allocation3], %s103_s22  ;;  %s399_s3 = scalar_lea.hbm %s596_s27, 128 }
  0x17   : > { %p400_p3 = scmp.ne.s32.totalorder %s596_s27, %s399_s3  ;;  %p401_p5 = pneg %p602_p0 }
  0x18   : > { %s404_s12 = scalar_lea.hbm %s701_s0, 256  ;;  %p405_p4 = scmp.lt.u32.totalorder %s596_s27, %s701_s0 }
  0x19   : > { %p402_p6 = pnand %p401_p5, %p400_p3  ;;  %p406_p10 = scmp.lt.u32.totalorder %s404_s12, %s399_s3 }
  0x1a   : > { %p408_p12 = scmp.lt.u32.totalorder %s399_s3, %s596_s27 }
  0x1b   : > { %p403_p7 = pneg %p402_p6  ;;  %p407_p13 = por %p406_p10, %p405_p4 }
  0x1d   : > { %p409_p1 = por %p408_p12, %p407_p13 }
  0x1f   : > { %p410_p2 = pnand %p409_p1, %p403_p7 }
  0x21   : > { %413 = shalt.err (!%p410_p2)
}
  0x22   : > { %s414_s16 = scalar_lea.vmem %s598_s29, 128  ;;  %s513_s17 = smov [#allocation2]  }
  0x23   : > { %p415_p3 = scmp.ne.s32.totalorder %s598_s29, %s414_s16  ;;  %s419_s22 = sshll.u32 %s513_s17, 4  ;;  %s420_s22 = int_to_ptr.vmem [resolvable:$false] %s419_s22 }
  0x24   : > { %s421_s23 = scalar_lea.vmem %s420_s22, 256  ;;  %p422_p9 = scmp.lt.s32.totalorder %s598_s29, %s420_s22 }
  0x25   : > { %p417_p6 = pnand %p415_p3, %p401_p5  ;;  %p423_p4 = scmp.lt.s32.totalorder %s421_s23, %s414_s16 }
  0x27   : > { %p418_p11 = pneg %p417_p6  ;;  %p424_p10 = por %p423_p4, %p422_p9 }
  0x29   : > { %p425_p12 = pnand %p424_p10, %p418_p11 }
  0x2b   : > { %428 = shalt.err (!%p425_p12)
}
  0x2c   : > { %342 = dma.hbm_to_vmem [thread:$0]  (!%p602_p0), %s596_s27, 128, %s598_s29, %s104_s2  }
  0x2d   : > { %p709_p1 = scmp.lt.s32.totalorder %s511_s11, 3  ;;  %p710_p2 = scmp.ge.s32.totalorder %s511_s11, 1 }
  0x2f   : > { %p122_p5 = pnand %p710_p2, %p709_p1 }
  0x30   : > { %s638_s24 = sand.u32 (!%p122_p5), 1, %s495_s7  }
  0x31   : > { %125 = sbr.rel (%p122_p5) target bundleno = 402 (0x192), region = 24  ;;  %s324_s25 = sshll.u32 (!%p122_p5), %s638_s24, 3 }
  0x32   : > { %s128_s26 = scalar_lea.sflag (!%p122_p5), [#allocation3], %s638_s24  ;;  %s131_s28 = scalar_lea.vmem (!%p122_p5), [#allocation2], %s324_s25 }
  0x38   : > { %482 = dma.done.wait (%p574_p8), %s128_s26, 128  }
  0x39   : > { %484 = vsyncadd (%p574_p8), %s128_s26, 4294967168  ;;  %v152_v0 = vld [vmem:[%s131_s28] sm:$0xff]  ;;  %s514_s27 = smov 127   ;;  %s515_s29 = smov 112   ;;  %v153_v1 = vlaneseq }
  0x3a   : > { %178 = vrot.lane.b32.xlu0 %v152_v0, %s514_s27  ;;  %s326_s30 = sshll.u32 %s503_s9, 7  ;;  %s325_s18 = sshll.u32 %s638_s24, 1 }
  0x3b   : > { %v156_v2 = vand.u32 127, %v153_v1  ;;  %s192_s2 = ssub.s32 240, %s326_s30  ;;  %s160_s3 = ssub.s32 256, %s326_s30  ;;  %v154_v33 = vshrl.u32 %v153_v1, 7 }
  0x3c   : > { %p193_p9 = scmp.lt.s32.totalorder %s192_s2, 112  ;;  %v161_v9 = vstv %s160_s3  ;;  %s328_s4 = sshll.u32 %s503_s9, 5 }
  0x3d   : > { %v163_v3 = vcvt.s32.f32 %v156_v2  ;;  %vm162_vm0 = vcmp.lt.s32.totalorder %v156_v2, %v161_v9  ;;  %s149_s12 = scalar_lea.vmem [#allocation5], %s325_s18  ;;  %vm214_vm4 = vcmp.eq.s32.totalorder %v154_v33, 0  ;;  %s652_s22 = scalar_lea.hbm %s702_s1, %s328_s4 }
  0x3e   : > { %200 = vrot.lane.b32.xlu0 %v152_v0, %s515_s29  ;;  %s722_s2 = smov (!%p193_p9, %s192_s2), 112  ;;  %s235_s13 = sshll.u32 %s149_s12, 4  ;;  %s654_s13 = int_to_ptr.vmem [resolvable:$true] %s235_s13 }
  0x3f   : > { %v164_v4 = vadd.f32 0.5, %v163_v3  ;;  %v195_v12 = vstv %s722_s2  ;;  %s220_s9 = scalar_lea.sflag [#allocation4], %s638_s24  ;;  %s429_s23 = scalar_lea.vmem %s654_s13, 32 }
  0x40   : > { %vm196_vm3 = vcmp.lt.s32.totalorder %v156_v2, %v195_v12  ;;  %p430_p8 = scmp.ne.s32.totalorder %s654_s13, %s429_s23  ;;  %p711_p11 = scmp.ne.s32.totalorder %s706_s19, 0 }
  0x41   : > { %v165_v5 = vmul.f32 0.0625, %v164_v4  ;;  %s516_s25 = smov [#allocation5]  }
  0x42   : > { %p431_p0 = pnand %p430_p8, %p711_p11  ;;  %s433_s26 = sshll.u32 %s516_s25, 4  ;;  %s434_s26 = int_to_ptr.vmem [resolvable:$false] %s433_s26 }
  0x43   : > { %v166_v6 = vfloor.f32 %v165_v5  ;;  %s435_s28 = scalar_lea.vmem %s434_s26, 64  ;;  %p436_p13 = scmp.lt.s32.totalorder %s654_s13, %s434_s26 }
  0x44   : > { %p432_p7 = pneg %p431_p0  ;;  %p437_p3 = scmp.lt.s32.totalorder %s435_s28, %s429_s23 }
  0x45   : > { %v167_v7 = vmul.f32 16.0, %v166_v6 }
  0x46   : > { %p438_p6 = por %p437_p3, %p436_p13 }
  0x47   : > { %v168_v8 = vsub.f32 %v163_v3, %v167_v7 }
  0x48   : > { %p439_p4 = pnand %p438_p6, %p432_p7 }
  0x49   : > { %vm169_vm1 = vcmp.lt.f32.partialorder %v168_v8, 14.5 }
  0x4a   : > { %vm177_vm2 = vmand %vm162_vm0, %vm169_vm1 }
  0xac   : > { %v179_v10 = vpop.permute.xlu0 %178 }
  0xad   : > { %v180_v11 = vsub.f32 %v179_v10, %v152_v0 }
  0xaf   : > { %v181_v13 = vsel %vm177_vm2, %v180_v11, 0.0 }
  0xb0   : > { %v201_v14 = vpop.permute.xlu0 %200  ;;  %v182_v15 = vmul.f32 %v181_v13, %v181_v13 }
  0xb1   : > { %v202_v16 = vsub.f32 %v201_v14, %v152_v0 }
  0xb2   : > { %183 = vadd.xlane.f32.xlu1 %v182_v15 }
  0xb3   : > { %v203_v17 = vsel %vm196_vm3, %v202_v16, 0.0 }
  0xb4   : > { %v204_v18 = vmul.f32 %v203_v17, %v203_v17 }
  0xb6   : > { %205 = vadd.xlane.f32.xlu1 %v204_v18 }
 0x13f   : > { %v184_v19 = vpop.xlane.xlu1 %183 }
 0x140   : > { %v185_v20 = vrot.slane %v184_v19, 4 }
 0x142   : > { %v186_v21 = vadd.f32 %v185_v20, %v184_v19 }
 0x143   : > { %v206_v22 = vpop.xlane.xlu1 %205 }
 0x144   : > { %v187_v23 = vrot.slane %v186_v21, 2  ;;  %v207_v24 = vrot.slane %v206_v22, 4 }
 0x146   : > { %v208_v25 = vadd.f32 %v207_v24, %v206_v22  ;;  %v188_v26 = vadd.f32 %v187_v23, %v186_v21 }
 0x148   : > { %v209_v27 = vrot.slane %v208_v25, 2  ;;  %v189_v28 = vrot.slane %v188_v26, 1 }
 0x14a   : > { %v210_v29 = vadd.f32 %v209_v27, %v208_v25  ;;  %v190_v30 = vadd.f32 %v189_v28, %v188_v26 }
 0x14c   : > { %331 = vpush %v190_v30  ;;  %v211_v31 = vrot.slane %v210_v29, 1 }
 0x14e   : > { %v212_v32 = vadd.f32 %v211_v31, %v210_v29 }
 0x150   : > { %333 = vpush %v212_v32 }
 0x17d   : > { %s332_s5 = spop %331 }
 0x17e   : > { %v216_v34 = vstv %s332_s5 }
 0x181   : > { %s334_s15 = spop %333 }
 0x182   : > { %v215_v35 = vstv %s334_s15 }
 0x183   : > { %v217_v36 = vsel %vm214_vm4, %v215_v35, %v216_v34 }
 0x184   : > { %218 = vst [vmem:[%s149_s12] sm:$0x3] %v217_v36 }
 0x185   : > { %442 = shalt.err (!%p439_p4)
}
 0x186   : > { %s443_s24 = scalar_lea.hbm %s652_s22, 32  ;;  %s447_s30 = scalar_lea.hbm %s702_s1, 64 }
 0x187   : > { %p444_p10 = scmp.ne.s32.totalorder %s652_s22, %s443_s24  ;;  %p448_p2 = scmp.lt.u32.totalorder %s652_s22, %s702_s1 }
 0x188   : > { %p449_p5 = scmp.lt.u32.totalorder %s447_s30, %s443_s24  ;;  %p451_p8 = scmp.lt.u32.totalorder %s443_s24, %s652_s22 }
 0x189   : > { %p445_p12 = pnand %p444_p10, %p711_p11 }
 0x18a   : > { %p450_p9 = por %p449_p5, %p448_p2 }
 0x18b   : > { %p446_p1 = pneg %p445_p12 }
 0x18c   : > { %p452_p0 = por %p451_p8, %p450_p9 }
 0x18e   : > { %p453_p7 = pnand %p452_p0, %p446_p1 }
 0x190   : > { %456 = shalt.err (!%p453_p7)
}
 0x191   : > { %337 = dma.vmem_to_hbm [thread:$0]  (%p711_p11), %s654_s13, 32, %s652_s22, %s220_s9  }
 0x192 PF: > { %s247_s18 = sand.u32 1, %s491_s6   ;;  %p712_p13 = scmp.ne.s32.totalorder %s707_s21, 0 }
 0x193   : > { %p713_p3 = scmp.ge.s32.totalorder %s511_s11, 2  ;;  %s248_s4 = scalar_lea.sflag [#allocation4], %s247_s18 }
 0x195   : > { %p344_p6 = pnand %p713_p3, %p712_p13 }
 0x197   : > { %486 = dma.done.wait (!%p344_p6), %s248_s4, 32  }
 0x198   : > { %488 = vsyncadd (!%p344_p6), %s248_s4, 4294967264  ;;  %s17_s11 = sadd.s32 1, %s511_s11   ;;  %s714_s6 = smov %s495_s7 }
 0x199   : > { %p14_p4 = scmp.ge.s32.totalorder %s17_s11, 4   ;;  %s715_s7 = smov %s499_s8 }
 0x19a   : > { %s716_s8 = smov %s583_s20  ;;  %s717_s9 = smov %s507_s10 }
 0x19b   : > { %s718_s10 = smov %s720_s14  ;;  %16 = sbr.rel (!%p14_p4) target bundleno = 6 (0x6), region = 69 }
 0x1a2   :  { %253 = vsyncpa [#allocation3], 1 }
 0x1a3   :  { %255 = vsyncpa [#allocation3 + $0x1], 1 }
 0x1a4   :  { %256 = vsyncpa [#allocation4], 1 }
 0x1a5   :  { %258 = vsyncpa [#allocation4 + $0x1], 1 }

</bundles_post_ra>
